<compile_context>
chip_gen: v5e
topology: v5e:2x2
jax: 0.10.0
libtpu: 0.0.40
codegen_flags: <defaults>
</compile_context>

<pallas_src>
import functools

import jax
import jax.numpy as jnp
from jax.experimental import pallas as pl
from jax.experimental.pallas import tpu as pltpu

GAMMA = 2                     # implemented as an explicit square (no float pow)
_MAX_ROWS_PER_TILE = 8192     # vreg-pressure cap on the row tile


def _round_up(x, m):
    return ((x + m - 1) // m) * m


def _vmem_limit_bytes():
    """Generation-aware scoped-VMEM request (v7x: 64 MiB/TC, v5e/v6e: 128 MiB)."""
    try:
        cap = int(pltpu.get_tpu_info().vmem_capacity_bytes)
    except Exception:
        cap = 64 * 1024 * 1024  # conservative fallback: v7x physical per-TC
    return int(min(cap // 2, 64 * 1024 * 1024))


def _focal_loss_kernel(logits_ref, targets_ref, out_ref, acc_ref, *,
                       n_total, tile_n, tiles_per_core):
    # logits_ref : (tile_n, C)   input dtype (f32 or bf16) in VMEM
    # targets_ref: (tile_n, 1)   int32 in VMEM
    # out_ref    : (1, 8, 128)   f32 per-core partial-sum block
    # acc_ref    : (tile_n, 1)   f32 VMEM scratch (per-core row accumulator)
    core = pl.program_id(0)
    step = pl.program_id(1)

    @pl.when(step == 0)
    def _init():
        acc_ref[...] = jnp.zeros_like(acc_ref)

    raw = logits_ref[...]                              # original dtype
    tgt = targets_ref[...]                             # (tile_n, 1) int32

    # Row max in the raw dtype; the f32 cast is fused into the subtract so no
    # standalone f32 copy of the tile is materialized.
    m = jnp.max(raw, axis=-1, keepdims=True)                         # (tile_n, 1)
    shifted = raw.astype(jnp.float32) - m.astype(jnp.float32)        # (tile_n, C)
    exp_s = jnp.exp(shifted)                                         # (tile_n, C)
    sum_exp = jnp.sum(exp_s, axis=-1, keepdims=True)                 # (tile_n, 1)
    lse = jnp.log(sum_exp)                                           # (tile_n, 1)

    # One-hot "gather" of the target column (TPU-friendly, no dynamic gather).
    col = jax.lax.broadcasted_iota(jnp.int32, shifted.shape, 1)      # (tile_n, C)
    onehot = col == tgt                                              # (tile_n, C)
    shifted_t = jnp.sum(jnp.where(onehot, shifted, 0.0), axis=-1, keepdims=True)

    ce = lse - shifted_t                 # -log p_target               (tile_n, 1)
    pt = jnp.exp(-ce)                    # cheap (tile_n,1) EUP op; no XLU reduce
    om = 1.0 - pt
    focal = om * om * ce                 # alpha == 1 -> no multiply, gamma==2

    # Mask rows past the true batch size (ragged trailing block / clamped
    # overshoot tiles).  jnp.where, not multiply, so garbage NaN/Inf stays out.
    global_tile = core * tiles_per_core + step
    row = jax.lax.broadcasted_iota(jnp.int32, focal.shape, 0) + global_tile * tile_n
    focal = jnp.where(row < n_total, focal, 0.0)

    acc_ref[...] += focal                # VPU-only accumulate, no scalar RAW dep

    @pl.when(step == pl.num_programs(1) - 1)
    def _finalize():
        partial = jnp.sum(acc_ref[...])  # single to-scalar reduce per core
        out_ref[...] = jnp.zeros(out_ref.shape, jnp.float32) + partial


def focal_loss(inputs, targets, *, max_rows_per_tile=None):
    """inputs: (N, C) float logits (f32 or bf16); targets: (N,) int class ids.

    Returns scalar mean focal loss (alpha=1, gamma=2), matching the PyTorch
    FocalLoss module's forward pass with reduction='mean'.
    """
    n, c = inputs.shape
    targets2d = targets.astype(jnp.int32).reshape(n, 1)

    itemsize = jnp.dtype(inputs.dtype).itemsize
    sublane = max(8, 32 // itemsize)          # 8 f32 / 16 bf16 / 32 int8-fp8
    vmem_limit = _vmem_limit_bytes()

    # --- tile_n from a VMEM byte budget ------------------------------------
    c_pad = _round_up(c, 128)                 # lane-padded width in VMEM
    per_row = (2 * c_pad * itemsize           # double-buffered logits block
               + 2 * 128 * 4                  # double-buffered (tile_n,1) i32 targets
               + 3 * c_pad * 4                # f32 intermediates (shifted/exp/select)
               + 128 * 4)                     # (tile_n,1) f32 accumulator scratch
    row_budget = max(sublane, int(0.6 * vmem_limit) // per_row)

    tile_n = min(row_budget, _MAX_ROWS_PER_TILE, _round_up(n, sublane))
    if max_rows_per_tile is not None:
        tile_n = min(tile_n, max_rows_per_tile)
    tile_n = max(sublane, _round_up(tile_n, sublane))

    num_tiles = int(pl.cdiv(n, tile_n))
    num_cores = 2 if num_tiles >= 2 else 1    # use both TCs on v7x; no-op on 1-TC chips
    tiles_per_core = int(pl.cdiv(num_tiles, num_cores))
    last_blk = num_tiles - 1

    # Clamp overshoot tiles (when num_tiles is not a multiple of num_cores) to a
    # valid block; their rows are >= n and fully masked inside the kernel.
    def in_map(core, step):
        return (jnp.minimum(core * tiles_per_core + step, last_blk), 0)

    def tgt_map(core, step):
        return (jnp.minimum(core * tiles_per_core + step, last_blk), 0)

    def out_map(core, step):
        return (core, 0, 0)

    cost = pl.CostEstimate(
        flops=int(6 * n * c + 12 * n),
        transcendentals=int(n * c + 2 * n),
        bytes_accessed=int(n * c * itemsize + n * 4 + num_cores * 8 * 128 * 4),
    )

    kernel = functools.partial(
        _focal_loss_kernel, n_total=n, tile_n=tile_n, tiles_per_core=tiles_per_core)

    out = pl.pallas_call(
        kernel,
        out_shape=jax.ShapeDtypeStruct((num_cores, 8, 128), jnp.float32),
        grid_spec=pltpu.PrefetchScalarGridSpec(
            num_scalar_prefetch=0,
            grid=(num_cores, tiles_per_core),
            in_specs=[
                pl.BlockSpec((tile_n, c), in_map),
                pl.BlockSpec((tile_n, 1), tgt_map),
            ],
            out_specs=pl.BlockSpec((1, 8, 128), out_map),
            scratch_shapes=[pltpu.VMEM((tile_n, 1), jnp.float32)],
        ),
        compiler_params=pltpu.CompilerParams(
            # Leading axis shards across v7x's two TensorCores (each core has
            # its own scratch + output slot); trailing axis is the reduction.
            dimension_semantics=("parallel", "arbitrary"),
            vmem_limit_bytes=vmem_limit,
        ),
        cost_estimate=cost,
    )(inputs, targets2d)                      # ship the original dtype (no host up-cast)

    # reduction == 'mean' over the TRUE number of rows, summing per-core partials.
    return jnp.sum(out[:, 0, 0]) / jnp.float32(n)


def _reference_focal_loss(inputs, targets):
    # Pure-JAX reference (same math as the PyTorch module, no Pallas).
    logp = jax.nn.log_softmax(inputs.astype(jnp.float32), axis=-1)
    ce = -jnp.take_along_axis(logp, targets[:, None].astype(jnp.int32), axis=-1)[:, 0]
    pt = jnp.exp(-ce)
    return jnp.mean((1.0 - pt) ** GAMMA * ce)


if __name__ == "__main__":
    key = jax.random.PRNGKey(0)
    k1, k2, k3, k4 = jax.random.split(key, 4)

    # Case 1: single tile / single core path (N=32 classification logits, C=16).
    N, C = 32, 16
    logits = jax.random.normal(k1, (N, C), dtype=jnp.float32)
    targets = jax.random.randint(k2, (N,), 0, C, dtype=jnp.int32)
    loss = jax.block_until_ready(focal_loss(logits, targets))
    ref = _reference_focal_loss(logits, targets)
    assert jnp.allclose(loss, ref, rtol=1e-5, atol=1e-5), (loss, ref)

    # Case 2: multi-tile + dual-core split + ragged trailing block, no host pad
    # (N=44 with 8-row tiles -> 6 tiles over grid (2, 3); rows 44..47 masked).
    N2, C2 = 44, 16
    logits2 = jax.random.normal(k3, (N2, C2), dtype=jnp.float32)
    targets2 = jax.random.randint(k4, (N2,), 0, C2, dtype=jnp.int32)
    loss2 = jax.block_until_ready(focal_loss(logits2, targets2, max_rows_per_tile=8))
    ref2 = _reference_focal_loss(logits2, targets2)
    assert jnp.allclose(loss2, ref2, rtol=1e-5, atol=1e-5), (loss2, ref2)

    # Case 3: bf16 logits, no host up-cast; 16-sublane tiles -> 3 tiles over
    # grid (2, 2) with one clamped overshoot tile and a ragged last block.
    logits3 = logits2.astype(jnp.bfloat16)
    loss3 = jax.block_until_ready(focal_loss(logits3, targets2, max_rows_per_tile=8))
    ref3 = _reference_focal_loss(logits3, targets2)
    assert jnp.allclose(loss3, ref3, rtol=1e-5, atol=1e-5), (loss3, ref3)

    print("KERNEL_OK")
</pallas_src>

<mosaic_0001>
module attributes {stable_mosaic.version = 11 : i64} {
  func.func @_focal_loss_kernel(%arg0: i32, %arg1: i32, %arg2: memref<32x16xf32, #tpu.memory_space<vmem>>, %arg3: memref<32x1xi32, #tpu.memory_space<vmem>>, %arg4: memref<1x8x128xf32, #tpu.memory_space<vmem>>, %arg5: memref<32x1xf32, #tpu.memory_space<vmem>>) attributes {dimension_semantics = [#tpu.dimension_semantics<parallel>, #tpu.dimension_semantics<arbitrary>], iteration_bounds = array<i64: 1, 1>, scalar_prefetch = 0 : i64, scratch_operands = 1 : i64, tpu.core_type = #tpu.core_type<tc>, window_params = [{transform_indices = @transform_0, window_bounds = array<i64: 32, 16>}, {transform_indices = @transform_1, window_bounds = array<i64: 32, 1>}, {transform_indices = @transform_2, window_bounds = array<i64: 1, 8, 128>}]} {
    %c0_i32 = arith.constant 0 : i32
    %0 = arith.cmpi eq, %arg1, %c0_i32 : i32
    %1 = arith.extui %0 : i1 to i32
    %c0_i32_0 = arith.constant 0 : i32
    %2 = arith.cmpi ne, %1, %c0_i32_0 : i32
    scf.if %2 {
      %cst_17 = arith.constant 0.000000e+00 : f32
      %44 = vector.broadcast %cst_17 : f32 to vector<32x1xf32>
      %c0_18 = arith.constant 0 : index
      %c0_19 = arith.constant 0 : index
      %45 = vector.load %arg5[%c0_18, %c0_19] : memref<32x1xf32, #tpu.memory_space<vmem>>, vector<32x1xf32>
      tpu.vector_store %arg5[%c0_18, %c0_19], %44 {strides = array<i32>} : memref<32x1xf32, #tpu.memory_space<vmem>>, vector<32x1xf32>,
    } else {
    }
    %c0 = arith.constant 0 : index
    %c0_1 = arith.constant 0 : index
    %3 = vector.load %arg2[%c0, %c0_1] : memref<32x16xf32, #tpu.memory_space<vmem>>, vector<32x16xf32>
    %c0_2 = arith.constant 0 : index
    %c0_3 = arith.constant 0 : index
    %4 = vector.load %arg3[%c0_2, %c0_3] : memref<32x1xi32, #tpu.memory_space<vmem>>, vector<32x1xi32>
    %cst = arith.constant dense<0xFF800000> : vector<32xf32>
    %5 = vector.multi_reduction <maximumf>, %3, %cst [1] : vector<32x16xf32> to vector<32xf32>
    %6 = vector.shape_cast %5 : vector<32xf32> to vector<32x1xf32>
    %7 = vector.broadcast %6 : vector<32x1xf32> to vector<32x16xf32>
    %8 = arith.subf %3, %7 : vector<32x16xf32>
    %9 = math.exp %8 : vector<32x16xf32>
    %cst_4 = arith.constant dense<0.000000e+00> : vector<32xf32>
    %10 = vector.multi_reduction <add>, %9, %cst_4 [1] : vector<32x16xf32> to vector<32xf32>
    %11 = vector.shape_cast %10 : vector<32xf32> to vector<32x1xf32>
    %12 = math.log %11 : vector<32x1xf32>
    %13 = tpu.iota {dimensions = array<i32: 1>} : vector<32x16xi32>
    %14 = vector.broadcast %4 : vector<32x1xi32> to vector<32x16xi32>
    %15 = arith.cmpi eq, %13, %14 : vector<32x16xi32>
    %cst_5 = arith.constant 0.000000e+00 : f32
    %16 = vector.broadcast %cst_5 : f32 to vector<32x16xf32>
    %17 = arith.select %15, %8, %16 : vector<32x16xi1>, vector<32x16xf32>
    %cst_6 = arith.constant dense<0.000000e+00> : vector<32xf32>
    %18 = vector.multi_reduction <add>, %17, %cst_6 [1] : vector<32x16xf32> to vector<32xf32>
    %19 = vector.shape_cast %18 : vector<32xf32> to vector<32x1xf32>
    %20 = arith.subf %12, %19 : vector<32x1xf32>
    %cst_7 = arith.constant 0.000000e+00 : f32
    %21 = vector.broadcast %cst_7 : f32 to vector<32x1xf32>
    %22 = arith.subf %21, %20 : vector<32x1xf32>
    %23 = math.exp %22 : vector<32x1xf32>
    %cst_8 = arith.constant 1.000000e+00 : f32
    %24 = vector.broadcast %cst_8 : f32 to vector<32x1xf32>
    %25 = arith.subf %24, %23 : vector<32x1xf32>
    %26 = arith.mulf %25, %25 : vector<32x1xf32>
    %27 = arith.mulf %26, %20 : vector<32x1xf32>
    %c1_i32 = arith.constant 1 : i32
    %28 = arith.muli %arg0, %c1_i32 : i32
    %29 = arith.addi %28, %arg1 : i32
    %30 = tpu.iota {dimensions = array<i32: 0>} : vector<32x1xi32>
    %c32_i32 = arith.constant 32 : i32
    %31 = arith.muli %29, %c32_i32 : i32
    %32 = vector.broadcast %31 : i32 to vector<32x1xi32>
    %33 = arith.addi %30, %32 : vector<32x1xi32>
    %c32_i32_9 = arith.constant 32 : i32
    %34 = vector.broadcast %c32_i32_9 : i32 to vector<32x1xi32>
    %35 = arith.cmpi slt, %33, %34 : vector<32x1xi32>
    %cst_10 = arith.constant 0.000000e+00 : f32
    %36 = vector.broadcast %cst_10 : f32 to vector<32x1xf32>
    %37 = arith.select %35, %27, %36 : vector<32x1xi1>, vector<32x1xf32>
    %c0_11 = arith.constant 0 : index
    %c0_12 = arith.constant 0 : index
    %38 = vector.load %arg5[%c0_11, %c0_12] : memref<32x1xf32, #tpu.memory_space<vmem>>, vector<32x1xf32>
    %39 = arith.addf %38, %37 : vector<32x1xf32>
    %c0_13 = arith.constant 0 : index
    %c0_14 = arith.constant 0 : index
    %40 = vector.load %arg5[%c0_13, %c0_14] : memref<32x1xf32, #tpu.memory_space<vmem>>, vector<32x1xf32>
    tpu.vector_store %arg5[%c0_13, %c0_14], %39 {strides = array<i32>} : memref<32x1xf32, #tpu.memory_space<vmem>>, vector<32x1xf32>,
    %c0_i32_15 = arith.constant 0 : i32
    %41 = arith.cmpi eq, %arg1, %c0_i32_15 : i32
    %42 = arith.extui %41 : i1 to i32
    %c0_i32_16 = arith.constant 0 : i32
    %43 = arith.cmpi ne, %42, %c0_i32_16 : i32
    scf.if %43 {
      %c0_17 = arith.constant 0 : index
      %c0_18 = arith.constant 0 : index
      %44 = vector.load %arg5[%c0_17, %c0_18] : memref<32x1xf32, #tpu.memory_space<vmem>>, vector<32x1xf32>
      %45 = vector.shape_cast %44 : vector<32x1xf32> to vector<1x32x1xf32>
      %cst_19 = arith.constant dense<0.000000e+00> : vector<1xf32>
      %46 = vector.multi_reduction <add>, %45, %cst_19 [1, 2] : vector<1x32x1xf32> to vector<1xf32>
      %47 = vector.shape_cast %46 : vector<1xf32> to vector<1x1x1xf32>
      %48 = vector.extract %47[0, 0, 0] : f32 from vector<1x1x1xf32>
      %cst_20 = arith.constant 0.000000e+00 : f32
      %49 = vector.broadcast %cst_20 : f32 to vector<1x8x128xf32>
      %50 = vector.broadcast %48 : f32 to vector<1x8x128xf32>
      %51 = arith.addf %49, %50 : vector<1x8x128xf32>
      %c0_21 = arith.constant 0 : index
      %c0_22 = arith.constant 0 : index
      %c0_23 = arith.constant 0 : index
      %52 = vector.load %arg4[%c0_21, %c0_22, %c0_23] : memref<1x8x128xf32, #tpu.memory_space<vmem>>, vector<1x8x128xf32>
      tpu.vector_store %arg4[%c0_21, %c0_22, %c0_23], %51 {strides = array<i32>} : memref<1x8x128xf32, #tpu.memory_space<vmem>>, vector<1x8x128xf32>,
    } else {
    }
    return
  }
  func.func @transform_0(%arg0: i32, %arg1: i32) -> (i32, i32) {
    %c1_i32 = arith.constant 1 : i32
    %0 = arith.muli %arg0, %c1_i32 : i32
    %1 = arith.addi %0, %arg1 : i32
    %c0_i32 = arith.constant 0 : i32
    %2 = arith.minsi %1, %c0_i32 : i32
    %c0_i32_0 = arith.constant 0 : i32
    %c0_i32_1 = arith.constant 0 : i32
    return %2, %c0_i32_0 : i32, i32
  }
  func.func @transform_1(%arg0: i32, %arg1: i32) -> (i32, i32) {
    %c1_i32 = arith.constant 1 : i32
    %0 = arith.muli %arg0, %c1_i32 : i32
    %1 = arith.addi %0, %arg1 : i32
    %c0_i32 = arith.constant 0 : i32
    %2 = arith.minsi %1, %c0_i32 : i32
    %c0_i32_0 = arith.constant 0 : i32
    %c0_i32_1 = arith.constant 0 : i32
    return %2, %c0_i32_0 : i32, i32
  }
  func.func @transform_2(%arg0: i32, %arg1: i32) -> (i32, i32, i32) {
    %c0_i32 = arith.constant 0 : i32
    %c0_i32_0 = arith.constant 0 : i32
    %c0_i32_1 = arith.constant 0 : i32
    return %arg0, %c0_i32, %c0_i32_0 : i32, i32, i32
  }
}

</mosaic_0001>

<bundles_post_ra>
// kernel: tpu_custom_call.1
= control target key start
LH: loop header
LB: loop body
LE: loop exit
PB: predicated region body
PF: predicated region fallthrough
CT: control target
= control target key end

     0   :  { %vm93_vm0 = vcmask 130048   ;;  %v345_v4 = vmov 0   ;;  %s414_s0 = inlined_call_operand.vmem [shape: f32[32,16], index: 0, kind: input, shape index: {}]   ;;  %s415_s1 = inlined_call_operand.vmem [shape: s32[32,1], index: 1, kind: input, shape index: {}]   ;;  %s416_s2 = inlined_call_operand.hbm [shape: f32[1,8,128], index: 2, kind: output, shape index: {}]  }
   0x1   :  { %v87_v0 = vld [vmem:[%s414_s0 + $0x10] sm:$0xff]  ;;  %v85_v1 = vld [vmem:[%s414_s0] sm:$0xff]  ;;  %292 = vset.pattern.permute.xlu2 %v345_v4  ;;  %293 = vset.pattern.permute.xlu0 %v345_v4 }
   0x2   :  { %v100_v2 = vsel %vm93_vm0, %v87_v0, -inf  ;;  %v94_v3 = vsel %vm93_vm0, %v85_v1, -inf  ;;  %v89_v5 = vld [vmem:[%s415_s1] sm:$0xff] }
   0x3   :  { %101 = vmax.xlane.f32.xlu1 %v100_v2  ;;  %95 = vmax.xlane.f32.xlu0 %v94_v3 }
   0x4   :  { %7 = vsyncpa [#allocation4], 0  ;;  %141 = vperm.xlu2 %292, %v89_v5   ;;  %294 = vset.pattern.permute.xlu1 %v345_v4  ;;  %v88_v6 = vld [vmem:[%s414_s0 + $0x18] sm:$0xff]  ;;  %v86_v7 = vld [vmem:[%s414_s0 + $0x8] sm:$0xff]  ;;  %v138_v19 = vlaneseq  ;;  %vm80_vm5 = vcmask 7168   ;;  %v346_v47 = vmov 0.0  }
   0x5   :  { %v103_v8 = vsel %vm93_vm0, %v88_v6, -inf  ;;  %v97_v9 = vsel %vm93_vm0, %v86_v7, -inf  ;;  %v90_v10 = vld [vmem:[%s415_s1 + $0x8] sm:$0xff]  ;;  %v91_v11 = vld [vmem:[%s415_s1 + $0x10] sm:$0xff]  ;;  %v92_v12 = vld [vmem:[%s415_s1 + $0x18] sm:$0xff]  ;;  %81 = vst.msk [vmem:[#allocation2] sm:$0xff] %vm80_vm5, %v346_v47 }
   0x6   :  { %v139_v22 = vand.u32 127, %v138_v19  ;;  %82 = vst.msk [vmem:[#allocation2 + $0x8] sm:$0xff] %vm80_vm5, %v346_v47  ;;  %s347_s0 = smov [#allocation3]   ;;  %s266_s27 = sshll.u32 %s416_s2, 4  ;;  %s267_s27 = int_to_ptr.hbm [resolvable:$true] %s266_s27 }
   0x7   :  { %83 = vst.msk [vmem:[#allocation2 + $0x10] sm:$0xff] %vm80_vm5, %v346_v47  ;;  %s264_s1 = sshll.u32 %s347_s0, 4  ;;  %s265_s1 = int_to_ptr.vmem [resolvable:$true] %s264_s1 }
   0x8   :  { %84 = vst.msk [vmem:[#allocation2 + $0x18] sm:$0xff] %vm80_vm5, %v346_v47 }
   0xb   :  { %104 = vmax.xlane.f32.xlu1 %v103_v8  ;;  %98 = vmax.xlane.f32.xlu0 %v97_v9 }
   0xc   :  { %144 = vperm.xlu2 %292, %v90_v10   ;;  %v220_v3 = vld [vmem:[#allocation2] sm:$0xff] }
  0x1f   :  { %147 = vperm.xlu0 %293, %v91_v11  }
  0x24   :  { %150 = vperm.xlu1 %294, %v92_v12  }
  0x5e   :  { %v142_v24 = vpop.permute.xlu2 %141 }
  0x5f   :  { %vm152_vm1 = vcmp.eq.s32.totalorder %v139_v22, %v142_v24 }
  0x66   :  { %v145_v32 = vpop.permute.xlu2 %144 }
  0x67   :  { %vm153_vm2 = vcmp.eq.s32.totalorder %v139_v22, %v145_v32 }
  0x76   :  { %v96_v13 = vpop.xlane.xlu0 %95  ;;  %v102_v14 = vpop.xlane.xlu1 %101 }
  0x77   :  { %v106_v15 = vsub.f32 %v85_v1, %v96_v13  ;;  %v108_v16 = vsub.f32 %v87_v0, %v102_v14 }
  0x79   :  { %v110_v17 = vmul.f32 1.442695, %v106_v15  ;;  %v114_v18 = vmul.f32 1.442695, %v108_v16  ;;  %v156_v30 = vsel %vm152_vm1, %v106_v15, 0.0 }
  0x7a   :  { %v160_v34 = vsel %vm93_vm0, %v156_v30, 0.0  ;;  %v222_v30 = vld [vmem:[#allocation2 + $0x10] sm:$0xff] }
  0x7b   :  { %295 = vpow2.f32 %v110_v17 }
  0x7c   :  { %297 = vpow2.f32 %v114_v18 }
  0x7e   :  { %v99_v20 = vpop.xlane.xlu0 %98  ;;  %v105_v29 = vpop.xlane.xlu1 %104 }
  0x7f   :  { %v107_v21 = vsub.f32 %v86_v7, %v99_v20  ;;  %v109_v33 = vsub.f32 %v88_v6, %v105_v29 }
  0x81   :  { %v296_v23 = vpop.eup %295  ;;  %v112_v25 = vmul.f32 1.442695, %v107_v21  ;;  %v116_v36 = vmul.f32 1.442695, %v109_v33  ;;  %v157_v37 = vsel %vm153_vm2, %v107_v21, 0.0 }
  0x82   :  { %v298_v26 = vpop.eup %297  ;;  %v118_v27 = vsel %vm93_vm0, %v296_v23, 0.0  ;;  %v163_v38 = vsel %vm93_vm0, %v157_v37, 0.0 }
  0x83   :  { %299 = vpow2.f32 %v112_v25  ;;  %119 = vadd.xlane.f32.xlu2 %v118_v27  ;;  %v124_v28 = vsel %vm93_vm0, %v298_v26, 0.0 }
  0x84   :  { %125 = vadd.xlane.f32.xlu0 %v124_v28  ;;  %301 = vpow2.f32 %v116_v36 }
  0x89   :  { %v300_v31 = vpop.eup %299 }
  0x8a   :  { %v121_v35 = vsel %vm93_vm0, %v300_v31, 0.0  ;;  %v302_v40 = vpop.eup %301  ;;  %v223_v31 = vld [vmem:[#allocation2 + $0x18] sm:$0xff] }
  0x8b   :  { %161 = vadd.xlane.f32.xlu2 %v160_v34  ;;  %122 = vadd.xlane.f32.xlu1 %v121_v35  ;;  %v127_v44 = vsel %vm93_vm0, %v302_v40, 0.0 }
  0x91   :  { %v148_v42 = vpop.permute.xlu0 %147 }
  0x92   :  { %vm154_vm4 = vcmp.eq.s32.totalorder %v139_v22, %v148_v42 }
  0x93   :  { %164 = vadd.xlane.f32.xlu2 %v163_v38  ;;  %v158_v45 = vsel %vm154_vm4, %v108_v16, 0.0  ;;  %v221_v16 = vld [vmem:[#allocation2 + $0x8] sm:$0xff] }
  0x94   :  { %v166_v46 = vsel %vm93_vm0, %v158_v45, 0.0 }
  0x96   :  { %v151_v39 = vpop.permute.xlu1 %150 }
  0x97   :  { %vm155_vm3 = vcmp.eq.s32.totalorder %v139_v22, %v151_v39 }
  0x98   :  { %v159_v41 = vsel %vm155_vm3, %v109_v33, 0.0 }
  0x99   :  { %v169_v43 = vsel %vm93_vm0, %v159_v41, 0.0 }
  0x9a   :  { %170 = vadd.xlane.f32.xlu1 %v169_v43 }
  0x9b   :  { %128 = vadd.xlane.f32.xlu2 %v127_v44 }
  0xa3   :  { %167 = vadd.xlane.f32.xlu2 %v166_v46 }
  0xf6   :  { %v120_v48 = vpop.xlane.xlu2 %119 }
  0xf7   :  { %303 = vlog2.f32 %v120_v48  ;;  %v126_v60 = vpop.xlane.xlu0 %125 }
  0xfd   :  { %v304_v49 = vpop.eup %303 }
  0xfe   :  { %v131_v50 = vmul.f32 0.6931472, %v304_v49  ;;  %v162_v51 = vpop.xlane.xlu2 %161  ;;  %v123_v52 = vpop.xlane.xlu1 %122 }
  0xff   :  { %305 = vlog2.f32 %v123_v52 }
 0x100   :  { %v172_v53 = vsub.f32 %v131_v50, %v162_v51 }
 0x102   :  { %v176_v54 = vsub.f32 0.0, %v172_v53 }
 0x104   :  { %v180_v55 = vmul.f32 1.442695, %v176_v54 }
 0x105   :  { %v306_v56 = vpop.eup %305 }
 0x106   :  { %307 = vpow2.f32 %v180_v55  ;;  %v133_v57 = vmul.f32 0.6931472, %v306_v56  ;;  %v165_v58 = vpop.xlane.xlu2 %164 }
 0x107   :  { %309 = vlog2.f32 %v126_v60 }
 0x108   :  { %v173_v59 = vsub.f32 %v133_v57, %v165_v58 }
 0x10a   :  { %v177_v61 = vsub.f32 0.0, %v173_v59 }
 0x10c   :  { %v308_v62 = vpop.eup %307  ;;  %v182_v63 = vmul.f32 1.442695, %v177_v61 }
 0x10d   :  { %v188_v0 = vsub.f32 1.0, %v308_v62  ;;  %v310_v5 = vpop.eup %309  ;;  %v171_v14 = vpop.xlane.xlu1 %170 }
 0x10e   :  { %311 = vpow2.f32 %v182_v63  ;;  %v129_v1 = vpop.xlane.xlu2 %128  ;;  %v135_v9 = vmul.f32 0.6931472, %v310_v5 }
 0x10f   :  { %v192_v2 = vmul.f32 %v188_v0, %v188_v0  ;;  %313 = vlog2.f32 %v129_v1 }
 0x111   :  { %v196_v4 = vmul.f32 %v192_v2, %v172_v53 }
 0x113   :  { %v224_v6 = vadd.f32 %v220_v3, %v196_v4 }
 0x114   :  { %v312_v7 = vpop.eup %311 }
 0x115   :  { %v314_v8 = vpop.eup %313  ;;  %229 = vst.msk [vmem:[#allocation2] sm:$0xff] %vm80_vm5, %v224_v6  ;;  %v189_v10 = vsub.f32 1.0, %v312_v7 }
 0x116   :  { %v137_v11 = vmul.f32 0.6931472, %v314_v8  ;;  %v168_v12 = vpop.xlane.xlu2 %167 }
 0x117   :  { %v193_v13 = vmul.f32 %v189_v10, %v189_v10  ;;  %v174_v15 = vsub.f32 %v135_v9, %v168_v12 }
 0x118   :  { %v175_v17 = vsub.f32 %v137_v11, %v171_v14 }
 0x119   :  { %v197_v18 = vmul.f32 %v193_v13, %v173_v59  ;;  %v178_v19 = vsub.f32 0.0, %v174_v15 }
 0x11a   :  { %v179_v20 = vsub.f32 0.0, %v175_v17 }
 0x11b   :  { %v225_v21 = vadd.f32 %v221_v16, %v197_v18  ;;  %v184_v22 = vmul.f32 1.442695, %v178_v19 }
 0x11c   :  { %v186_v23 = vmul.f32 1.442695, %v179_v20  ;;  %v236_v37 = vld [vmem:[#allocation2] sm:$0xff] }
 0x11d   :  { %230 = vst.msk [vmem:[#allocation2 + $0x8] sm:$0xff] %vm80_vm5, %v225_v21  ;;  %315 = vpow2.f32 %v184_v22  ;;  %v240_v39 = vsel %vm80_vm5, %v236_v37, 0.0 }
 0x11e   :  { %317 = vpow2.f32 %v186_v23 }
 0x123   :  { %v316_v24 = vpop.eup %315 }
 0x124   :  { %v318_v25 = vpop.eup %317  ;;  %v190_v26 = vsub.f32 1.0, %v316_v24  ;;  %v237_v36 = vld [vmem:[#allocation2 + $0x8] sm:$0xff] }
 0x125   :  { %v191_v27 = vsub.f32 1.0, %v318_v25  ;;  %v241_v38 = vsel %vm80_vm5, %v237_v36, 0.0 }
 0x126   :  { %v194_v28 = vmul.f32 %v190_v26, %v190_v26  ;;  %v242_v41 = vadd.f32 %v241_v38, %v240_v39 }
 0x127   :  { %v195_v29 = vmul.f32 %v191_v27, %v191_v27 }
 0x128   :  { %v198_v32 = vmul.f32 %v194_v28, %v174_v15 }
 0x129   :  { %v199_v33 = vmul.f32 %v195_v29, %v175_v17 }
 0x12a   :  { %v226_v34 = vadd.f32 %v222_v30, %v198_v32 }
 0x12b   :  { %v227_v35 = vadd.f32 %v223_v31, %v199_v33 }
 0x12c   :  { %231 = vst.msk [vmem:[#allocation2 + $0x10] sm:$0xff] %vm80_vm5, %v226_v34 }
 0x12d   :  { %232 = vst.msk [vmem:[#allocation2 + $0x18] sm:$0xff] %vm80_vm5, %v227_v35 }
 0x133   :  { %v238_v40 = vld [vmem:[#allocation2 + $0x10] sm:$0xff] }
 0x134   :  { %v239_v42 = vld [vmem:[#allocation2 + $0x18] sm:$0xff]  ;;  %v243_v43 = vsel %vm80_vm5, %v238_v40, 0.0 }
 0x135   :  { %v244_v44 = vadd.f32 %v243_v43, %v242_v41  ;;  %v245_v45 = vsel %vm80_vm5, %v239_v42, 0.0 }
 0x137   :  { %v246_v46 = vadd.f32 %v245_v45, %v244_v44 }
 0x139   :  { %247 = vadd.xlane.f32.xlu2 %v246_v46 }
 0x1ac   :  { %v248_v47 = vpop.xlane.xlu2 %247 }
 0x1ad   :  { %v249_v48 = vrot.slane %v248_v47, 4 }
 0x1af   :  { %v250_v49 = vadd.f32 %v249_v48, %v248_v47 }
 0x1b1   :  { %v251_v50 = vrot.slane %v250_v49, 2 }
 0x1b3   :  { %v252_v51 = vadd.f32 %v251_v50, %v250_v49 }
 0x1b5   :  { %v253_v52 = vrot.slane %v252_v51, 1 }
 0x1b7   :  { %v254_v53 = vadd.f32 %v253_v52, %v252_v51 }
 0x1b9   :  { %287 = vpush %v254_v53 }
 0x1ea   :  { %s288_s28 = spop %287 }
 0x1eb   :  { %v256_v54 = vstv %s288_s28 }
 0x1ec   :  { %258 = vst [vmem:[#allocation3] sm:$0xff] %v256_v54 }
 0x1ed   :  { %269 = dma.vmem_to_hbm [thread:$0]  %s265_s1, 128, %s267_s27, [#allocation4]  }
 0x1ee   :  { %343 = dma.done.wait [#allocation4], 128  }
 0x1ef   :  { %344 = vsyncadd [#allocation4], 4294967168 }
 0x1f0   :  { %274 = vsyncpa [#allocation4], 1 }

</bundles_post_ra>
